<compile_context>
chip_gen: v7x
topology: tpu7x:2x2x1
jax: 0.10.0
libtpu: 0.0.40
codegen_flags: <defaults>
</compile_context>

<pallas_src>
import math
import jax
import jax.numpy as jnp
from jax.experimental import pallas as pl
from jax.experimental.pallas import tpu as pltpu


def _same_padding(size_in, k, stride, dil=1):
    # Replicates conv2d_same_padding exactly: the reference derives the W
    # ("cols") padding from the H ("rows") formula as well.
    # TODO(synk): this diverges from true 'same' padding whenever H != W,
    # KH != KW, or per-axis strides differ -- kept to match the quirky spec.
    out = (size_in + stride - 1) // stride
    pad_total = max(0, (out - 1) * stride + (k - 1) * dil + 1 - size_in)
    odd = pad_total % 2 != 0
    return pad_total // 2, pad_total // 2 + int(odd)


def make_conv_block_kernel(nb, C_out, HW, eps=1e-5):
    inv_hw = 1.0 / float(HW)

    def kernel(p_ref, w_ref, o_ref):
        # p_ref: (K, nb*HW)   lane-dense im2col columns for nb images
        # w_ref: (C_out, K)   pre-flattened conv weight
        # o_ref: (nb, C_out, HW)
        # Single MXU matmul for all nb images in this grid step, f32 accumulate.
        acc = jnp.dot(w_ref[...], p_ref[...],
                      preferred_element_type=jnp.float32)     # (C_out, nb*HW)

        # Per-image InstanceNorm2d (no affine, biased variance, eps) + ReLU.
        # Static lane slices (128-aligned when HW % 128 == 0); nb is small so
        # this Python unroll is cheap VPU/XLU work only -- the MXU part above
        # is already fully batched.
        for bi in range(nb):
            a = acc[:, bi * HW:(bi + 1) * HW]                 # (C_out, HW) f32
            s = jnp.sum(a, axis=1, keepdims=True)
            s2 = jnp.sum(a * a, axis=1, keepdims=True)
            mean = s * inv_hw
            var = s2 * inv_hw - mean * mean
            y = (a - mean) * jax.lax.rsqrt(var + eps)
            o_ref[bi] = jnp.maximum(y, 0.0).astype(o_ref.dtype)

    return kernel


def _pick_batch_block(N, HW, K, C_out, patch_itemsize, out_itemsize,
                      num_tensorcores=1, vmem_budget_bytes=16 << 20):
    """Pick images-per-grid-step (nb).

    * Tiling rule: the patch block's last dim (nb*HW) must be a 128-multiple
      unless the block spans the full batch (nb == N).
    * Single-TC chips (v5e/v6e): let nb grow to N (grid=(1,)) -- no second core
      to feed, fewer steps amortize the ~0.35us/step overhead.
    * v7x (2 TCs): keep the grid length a multiple of the core count so the
      "parallel" axis splits evenly across cores.
    * Cap the per-step VMEM footprint (double-buffered in/out blocks + f32
      accumulator) well under the default scoped VMEM limit.
    """
    per_img = HW * (2 * K * patch_itemsize + 2 * C_out * out_itemsize
                    + 4 * C_out)
    vmem_cap = max(1, vmem_budget_bytes // max(per_img, 1))
    target = min(N, vmem_cap)
    if num_tensorcores > 1:
        target = min(target, max(1, N // num_tensorcores))
    for nb in range(target, 0, -1):
        if N % nb:
            continue
        if nb != N and (nb * HW) % 128:
            continue
        if num_tensorcores > 1 and nb != 1 and (N // nb) % num_tensorcores:
            continue
        return nb
    return N  # full-batch block is always a legal tiling


def conv_block_forward(x, weight, bias=None, stride=1, eps=1e-5,
                       batch_block=None, num_tensorcores=1,
                       force_bf16_matmul=False):
    # `bias` is accepted for API parity with Conv_Block but is algebraically
    # canceled by the non-affine InstanceNorm that follows the conv, so it is
    # never sent to the kernel (pure compute/DMA saving, identical output).
    del bias

    N, C_in, H_in, W_in = x.shape
    C_out, _, KH, KW = weight.shape
    dil = 1

    pad_lo, pad_hi = _same_padding(H_in, KH, stride, dil)
    Hp = H_in + pad_lo + pad_hi
    Wp = W_in + pad_lo + pad_hi          # width padding uses the H formula (quirk)
    H_out = (Hp - (KH - 1) * dil - 1) // stride + 1
    W_out = (Wp - (KW - 1) * dil - 1) // stride + 1
    HW = H_out * W_out
    K = KH * KW * C_in

    # bf16 inputs -> bf16 MXU operands (f32 accumulate); f32 stays f32 unless
    # the caller opts into bf16 (relaxed-tolerance fast path on v6e/v7x).
    mm_dtype = (jnp.bfloat16
                if (x.dtype == jnp.bfloat16 or force_bf16_matmul)
                else jnp.float32)

    nb = batch_block if batch_block is not None else _pick_batch_block(
        N, HW, K, C_out,
        jnp.dtype(mm_dtype).itemsize, jnp.dtype(x.dtype).itemsize,
        num_tensorcores)
    assert N % nb == 0, "batch block must divide N"
    assert nb == N or (nb * HW) % 128 == 0, \
        "patch block last dim must be a 128-multiple (or cover the full batch)"

    # ---- im2col hoisted to the wrapper (one-off XLA work, lane-dense) -------
    # Extra HBM traffic is KH*KW x the activation (~tens of KB per 16x16 image)
    # -- negligible next to the lane-density win inside the kernel.
    xp = jnp.pad(x.astype(mm_dtype),
                 ((0, 0), (0, 0), (pad_lo, pad_hi), (pad_lo, pad_hi)))
    cols = []
    for kh in range(KH):
        for kw in range(KW):
            patch = xp[:, :,
                       kh:kh + (H_out - 1) * stride + 1:stride,
                       kw:kw + (W_out - 1) * stride + 1:stride]
            cols.append(patch.reshape(N, C_in, HW))
    patches = jnp.concatenate(cols, axis=1)            # (N, K, HW), K = (kh,kw,c)
    patches = jnp.transpose(patches, (1, 0, 2)).reshape(K, N * HW)

    # (C_out, C_in, KH, KW) -> (C_out, KH, KW, C_in) -> (C_out, K): matches the
    # (kh, kw, c)-ordered im2col rows. Done once in the wrapper.
    w2d = jnp.transpose(weight, (0, 2, 3, 1)).reshape(C_out, K).astype(mm_dtype)

    kernel = make_conv_block_kernel(nb, C_out, HW, eps)

    # TODO(synk): for much larger C/H/W (esp. v7x's 64 MiB VMEM), add an HW-tile
    # grid axis with sum/sumsq scratch + pl.when finalize for InstanceNorm and
    # set vmem_limit_bytes explicitly; shrink nb before shrinking the HW tile.
    out_flat = pl.pallas_call(
        kernel,
        out_shape=jax.ShapeDtypeStruct((N, C_out, HW), x.dtype),
        grid_spec=pltpu.PrefetchScalarGridSpec(
            num_scalar_prefetch=0,
            grid=(N // nb,),
            in_specs=[
                pl.BlockSpec((K, nb * HW), lambda n: (0, n)),
                pl.BlockSpec((C_out, K), lambda n: (0, 0)),
            ],
            out_specs=pl.BlockSpec((nb, C_out, HW), lambda n: (n, 0, 0)),
        ),
        compiler_params=pltpu.CompilerParams(
            dimension_semantics=("parallel",)),
    )(patches, w2d)

    # Free layout change in XLA; the kernel output stays lane-dense.
    return out_flat.reshape(N, C_out, H_out, W_out)


def conv_block_reference(x, weight, bias, stride=1, eps=1e-5):
    # Pure-JAX reference (keeps the bias, i.e. the exact PyTorch computation).
    N, C_in, H_in, W_in = x.shape
    C_out, _, KH, KW = weight.shape
    pad_lo, pad_hi = _same_padding(H_in, KH, stride)
    xp = jnp.pad(x, ((0, 0), (0, 0), (pad_lo, pad_hi), (pad_lo, pad_hi)))
    y = jax.lax.conv_general_dilated(
        xp, weight, window_strides=(stride, stride), padding='VALID',
        dimension_numbers=('NCHW', 'OIHW', 'NCHW'))
    y = y + bias.reshape(1, C_out, 1, 1)
    mean = y.mean(axis=(2, 3), keepdims=True)
    var = ((y - mean) ** 2).mean(axis=(2, 3), keepdims=True)
    y = (y - mean) / jnp.sqrt(var + eps)
    return jnp.maximum(y, 0.0)


if __name__ == "__main__":
    key = jax.random.PRNGKey(0)

    def run_case(N, C_in, C_out, H, W, KH, stride, case_key, **kw):
        kx, kw_, kb = jax.random.split(case_key, 3)
        # Deterministic init mirroring ConvNd_new.reset_parameters:
        # stdv = 1 / sqrt(in_channels * prod(kernel_size)), uniform(-stdv, stdv)
        stdv = 1.0 / math.sqrt(C_in * KH * KH)
        weight = jax.random.uniform(kw_, (C_out, C_in, KH, KH),
                                    minval=-stdv, maxval=stdv,
                                    dtype=jnp.float32)
        bias = jax.random.uniform(kb, (C_out,), minval=-stdv, maxval=stdv,
                                  dtype=jnp.float32)
        x = jax.random.normal(kx, (N, C_in, H, W), dtype=jnp.float32)

        out = jax.block_until_ready(
            conv_block_forward(x, weight, bias, stride, **kw))
        ref = conv_block_reference(x, weight, bias, stride)
        assert out.shape == ref.shape
        err = jnp.max(jnp.abs(out - ref))
        assert jnp.allclose(out, ref, atol=1e-4, rtol=1e-4), \
            f"max abs diff {err}"

    k1, k2, k3 = jax.random.split(key, 3)
    # Conv_Block(4, 8, kernel_size=3, stride=1), batch=2:
    # single-core heuristic -> nb = N, grid=(1,) (all images in one matmul).
    run_case(2, 4, 8, 16, 16, 3, 1, k1)
    # batch=4 on a 2-TensorCore budget -> nb=2, grid=(2,) (even parallel split).
    run_case(4, 4, 8, 16, 16, 3, 1, k2, num_tensorcores=2)
    # explicit batch_block=1 exercises the single-image-per-step path.
    run_case(2, 4, 8, 16, 16, 3, 1, k3, batch_block=1)

    print("KERNEL_OK")
</pallas_src>

<mosaic_0001>
module attributes {stable_mosaic.version = 11 : i64} {
  func.func @kernel(%arg0: i32, %arg1: memref<36x512xf32, #tpu.memory_space<vmem>>, %arg2: memref<8x36xf32, #tpu.memory_space<vmem>>, %arg3: memref<2x8x256xf32, #tpu.memory_space<vmem>>) attributes {dimension_semantics = [#tpu.dimension_semantics<parallel>], iteration_bounds = array<i64: 1>, scalar_prefetch = 0 : i64, scratch_operands = 0 : i64, tpu.core_type = #tpu.core_type<tc>, window_params = [{transform_indices = @transform_0, window_bounds = array<i64: 36, 512>}, {pipeline_mode = #tpu.pipeline_mode<synchronous>, transform_indices = @transform_1, window_bounds = array<i64: 8, 36>}, {transform_indices = @transform_2, window_bounds = array<i64: 2, 8, 256>}]} {
    %c0 = arith.constant 0 : index
    %c0_0 = arith.constant 0 : index
    %0 = vector.load %arg2[%c0, %c0_0] : memref<8x36xf32, #tpu.memory_space<vmem>>, vector<8x36xf32>
    %c0_1 = arith.constant 0 : index
    %c0_2 = arith.constant 0 : index
    %1 = vector.load %arg1[%c0_1, %c0_2] : memref<36x512xf32, #tpu.memory_space<vmem>>, vector<36x512xf32>
    %cst = arith.constant dense<0.000000e+00> : vector<8x512xf32>
    %2 = tpu.matmul %0, %1, %cst {dimension_numbers = #tpu.dot_dimension_numbers<[1], [0], [0], [1], [0, 0, 1, 1], [], []>} : vector<8x36xf32>, vector<36x512xf32>, vector<8x512xf32> -> vector<8x512xf32>
    %3 = vector.extract_strided_slice %2 {offsets = [0, 0], sizes = [8, 256], strides = [1, 1]} : vector<8x512xf32> to vector<8x256xf32>
    %cst_3 = arith.constant dense<0.000000e+00> : vector<8xf32>
    %4 = vector.multi_reduction <add>, %3, %cst_3 [1] : vector<8x256xf32> to vector<8xf32>
    %5 = vector.shape_cast %4 : vector<8xf32> to vector<8x1xf32>
    %6 = arith.mulf %3, %3 : vector<8x256xf32>
    %cst_4 = arith.constant dense<0.000000e+00> : vector<8xf32>
    %7 = vector.multi_reduction <add>, %6, %cst_4 [1] : vector<8x256xf32> to vector<8xf32>
    %8 = vector.shape_cast %7 : vector<8xf32> to vector<8x1xf32>
    %cst_5 = arith.constant 3.906250e-03 : f32
    %9 = vector.broadcast %cst_5 : f32 to vector<8x1xf32>
    %10 = arith.mulf %5, %9 : vector<8x1xf32>
    %cst_6 = arith.constant 3.906250e-03 : f32
    %11 = vector.broadcast %cst_6 : f32 to vector<8x1xf32>
    %12 = arith.mulf %8, %11 : vector<8x1xf32>
    %13 = arith.mulf %10, %10 : vector<8x1xf32>
    %14 = arith.subf %12, %13 : vector<8x1xf32>
    %15 = vector.broadcast %10 : vector<8x1xf32> to vector<8x256xf32>
    %16 = arith.subf %3, %15 : vector<8x256xf32>
    %cst_7 = arith.constant 9.99999974E-6 : f32
    %17 = vector.broadcast %cst_7 : f32 to vector<8x1xf32>
    %18 = arith.addf %14, %17 : vector<8x1xf32>
    %19 = math.rsqrt %18 : vector<8x1xf32>
    %20 = vector.broadcast %19 : vector<8x1xf32> to vector<8x256xf32>
    %21 = arith.mulf %16, %20 : vector<8x256xf32>
    %cst_8 = arith.constant 0.000000e+00 : f32
    %22 = vector.broadcast %cst_8 : f32 to vector<8x256xf32>
    %23 = arith.maximumf %21, %22 : vector<8x256xf32>
    %c0_9 = arith.constant 0 : index
    %c0_10 = arith.constant 0 : index
    %c0_11 = arith.constant 0 : index
    %24 = vector.load %arg3[%c0_9, %c0_10, %c0_11] : memref<2x8x256xf32, #tpu.memory_space<vmem>>, vector<1x8x256xf32>
    %25 = vector.shape_cast %24 : vector<1x8x256xf32> to vector<8x256xf32>
    %26 = vector.shape_cast %23 : vector<8x256xf32> to vector<1x8x256xf32>
    tpu.vector_store %arg3[%c0_9, %c0_10, %c0_11], %26 {strides = array<i32>} : memref<2x8x256xf32, #tpu.memory_space<vmem>>, vector<1x8x256xf32>,
    %27 = vector.extract_strided_slice %2 {offsets = [0, 256], sizes = [8, 256], strides = [1, 1]} : vector<8x512xf32> to vector<8x256xf32>
    %cst_12 = arith.constant dense<0.000000e+00> : vector<8xf32>
    %28 = vector.multi_reduction <add>, %27, %cst_12 [1] : vector<8x256xf32> to vector<8xf32>
    %29 = vector.shape_cast %28 : vector<8xf32> to vector<8x1xf32>
    %30 = arith.mulf %27, %27 : vector<8x256xf32>
    %cst_13 = arith.constant dense<0.000000e+00> : vector<8xf32>
    %31 = vector.multi_reduction <add>, %30, %cst_13 [1] : vector<8x256xf32> to vector<8xf32>
    %32 = vector.shape_cast %31 : vector<8xf32> to vector<8x1xf32>
    %cst_14 = arith.constant 3.906250e-03 : f32
    %33 = vector.broadcast %cst_14 : f32 to vector<8x1xf32>
    %34 = arith.mulf %29, %33 : vector<8x1xf32>
    %cst_15 = arith.constant 3.906250e-03 : f32
    %35 = vector.broadcast %cst_15 : f32 to vector<8x1xf32>
    %36 = arith.mulf %32, %35 : vector<8x1xf32>
    %37 = arith.mulf %34, %34 : vector<8x1xf32>
    %38 = arith.subf %36, %37 : vector<8x1xf32>
    %39 = vector.broadcast %34 : vector<8x1xf32> to vector<8x256xf32>
    %40 = arith.subf %27, %39 : vector<8x256xf32>
    %cst_16 = arith.constant 9.99999974E-6 : f32
    %41 = vector.broadcast %cst_16 : f32 to vector<8x1xf32>
    %42 = arith.addf %38, %41 : vector<8x1xf32>
    %43 = math.rsqrt %42 : vector<8x1xf32>
    %44 = vector.broadcast %43 : vector<8x1xf32> to vector<8x256xf32>
    %45 = arith.mulf %40, %44 : vector<8x256xf32>
    %cst_17 = arith.constant 0.000000e+00 : f32
    %46 = vector.broadcast %cst_17 : f32 to vector<8x256xf32>
    %47 = arith.maximumf %45, %46 : vector<8x256xf32>
    %c1 = arith.constant 1 : index
    %c0_18 = arith.constant 0 : index
    %c0_19 = arith.constant 0 : index
    %48 = vector.load %arg3[%c1, %c0_18, %c0_19] : memref<2x8x256xf32, #tpu.memory_space<vmem>>, vector<1x8x256xf32>
    %49 = vector.shape_cast %48 : vector<1x8x256xf32> to vector<8x256xf32>
    %50 = vector.shape_cast %47 : vector<8x256xf32> to vector<1x8x256xf32>
    tpu.vector_store %arg3[%c1, %c0_18, %c0_19], %50 {strides = array<i32>} : memref<2x8x256xf32, #tpu.memory_space<vmem>>, vector<1x8x256xf32>,
    return
  }
  func.func @transform_0(%arg0: i32) -> (i32, i32) {
    %c0_i32 = arith.constant 0 : i32
    %c0_i32_0 = arith.constant 0 : i32
    return %c0_i32, %arg0 : i32, i32
  }
  func.func @transform_1(%arg0: i32) -> (i32, i32) {
    %c0_i32 = arith.constant 0 : i32
    %c0_i32_0 = arith.constant 0 : i32
    %c0_i32_1 = arith.constant 0 : i32
    return %c0_i32, %c0_i32_0 : i32, i32
  }
  func.func @transform_2(%arg0: i32) -> (i32, i32, i32) {
    %c0_i32 = arith.constant 0 : i32
    %c0_i32_0 = arith.constant 0 : i32
    %c0_i32_1 = arith.constant 0 : i32
    return %arg0, %c0_i32, %c0_i32_0 : i32, i32, i32
  }
}

</mosaic_0001>

<bundles_post_ra>
// kernel: tpu_custom_call.1
= control target key start
LH: loop header
LB: loop body
LE: loop exit
PB: predicated region body
PF: predicated region fallthrough
CT: control target
= control target key end

     0   :  { %7 = vsyncpa [#allocation3], 0  ;;  %s446_s0 = inlined_call_operand.hbm [shape: f32[36,512], index: 0, kind: input, shape index: {}]   ;;  %s447_s1 = inlined_call_operand.hbm [shape: f32[8,36], index: 1, kind: input, shape index: {}]   ;;  %s448_s2 = inlined_call_operand.hbm [shape: f32[2,8,256], index: 2, kind: output, shape index: {}]  }
   0x1   :  { %8 = vsyncpa [#allocation6], 0 }
   0x2   :  { %9 = vsyncpa [#allocation4], 0  ;;  %s387_s9 = smov [#allocation2]   ;;  %s315_s13 = scalar_lea.hbm %s446_s0, 2560 }
   0x3   :  { %s15_s10 = sshll.u32 %s387_s9, 4  ;;  %p316_p0 = scmp.ne.s32.totalorder %s446_s0, %s315_s13  ;;  %s16_s10 = int_to_ptr.vmem [resolvable:$true] %s15_s10 }
   0x4   :  { %p319_p1 = scmp.lt.u32.totalorder %s315_s13, %s446_s0 }
   0x6   :  { %p321_p2 = pnand %p319_p1, %p316_p0 }
   0x8   :  { %324 = shalt.err (!%p321_p2)
}
   0x9   :  { %s325_s18 = scalar_lea.vmem %s16_s10, 2560  ;;  %p330_p4 = scmp.lt.s32.totalorder %s16_s10, %s16_s10 }
   0xa   :  { %p326_p3 = scmp.ne.s32.totalorder %s16_s10, %s325_s18  ;;  %p331_p5 = scmp.lt.s32.totalorder %s325_s18, %s325_s18 }
   0xc   :  { %p332_p6 = por %p331_p5, %p330_p4 }
   0xe   :  { %p333_p7 = pnand %p332_p6, %p326_p3 }
  0x10   :  { %336 = shalt.err (!%p333_p7)
}
  0x11   :  { %s388_s19 = smov 512   ;;  %s389_s20 = smov 32  }
  0x12   :  { %21 = dma.hbm_to_vmem [thread:$0]  %s446_s0, 2560, %s16_s10, [#allocation3], %s388_s19, %s388_s19, %s389_s20  }
  0x13   :  { %s390_s23 = smov [#allocation5]   ;;  %s337_s27 = scalar_lea.hbm %s447_s1, 128 }
  0x14   :  { %s28_s24 = sshll.u32 %s390_s23, 4  ;;  %p338_p8 = scmp.ne.s32.totalorder %s447_s1, %s337_s27  ;;  %s29_s24 = int_to_ptr.vmem [resolvable:$true] %s28_s24 }
  0x15   :  { %p341_p9 = scmp.lt.u32.totalorder %s337_s27, %s447_s1 }
  0x17   :  { %p343_p10 = pnand %p341_p9, %p338_p8 }
  0x19   :  { %346 = shalt.err (!%p343_p10)
}
  0x1a   :  { %s347_s4 = scalar_lea.vmem %s29_s24, 128  ;;  %p352_p12 = scmp.lt.s32.totalorder %s29_s24, %s29_s24 }
  0x1b   :  { %p348_p11 = scmp.ne.s32.totalorder %s29_s24, %s347_s4  ;;  %p353_p13 = scmp.lt.s32.totalorder %s347_s4, %s347_s4 }
  0x1d   :  { %p354_p0 = por %p353_p13, %p352_p12 }
  0x1f   :  { %p355_p1 = pnand %p354_p0, %p348_p11 }
  0x21   :  { %358 = shalt.err (!%p355_p1)
}
  0x22   :  { %31 = dma.hbm_to_vmem [thread:$0]  %s447_s1, 128, %s29_s24, [#allocation6]  }
  0x23   :  { %381 = dma.done.wait [#allocation3], 2560  }
  0x24   :  { %382 = vsyncadd [#allocation3], 4294964736 }
  0x25   :  { %383 = dma.done.wait [#allocation6], 128  }
  0x26   :  { %384 = vsyncadd [#allocation6], 4294967168  ;;  %v391_v0 = vmov 0.0   ;;  %v40_v1 = vld [vmem:[#allocation2 + $0x8] sm:$0xff]  ;;  %v39_v3 = vld [vmem:[#allocation2] sm:$0xff]  ;;  %vm63_vm0 = vcmask 1043456  }
  0x27   :  { %140 = vmatprep.mubr.f32.mxu0 %v391_v0  ;;  %211 = vmatprep.mubr.f32.mxu1 %v391_v0  ;;  %v44_v2 = vld [vmem:[#allocation2 + $0x28] sm:$0xff]  ;;  %v43_v5 = vld [vmem:[#allocation2 + $0x20] sm:$0xff]  ;;  %v42_v6 = vld [vmem:[#allocation2 + $0x18] sm:$0xff]  ;;  %vm59_vm1 = vcmask 293888   ;;  %s392_s1 = smov [#allocation7]  }
  0x28   :  { %v287_v4 = vpack.c.bf16 %v44_v2, %v40_v1  ;;  %v46_v7 = vld [vmem:[#allocation2 + $0x38] sm:$0xff]  ;;  %v289_v8 = vpack.c.bf16 %v43_v5, %v39_v3  ;;  %v48_v10 = vld [vmem:[#allocation2 + $0x48] sm:$0xff]  ;;  %v41_v12 = vld [vmem:[#allocation2 + $0x10] sm:$0xff]  ;;  %s268_s6 = sshll.u32 %s392_s1, 4  ;;  %s269_s6 = int_to_ptr.vmem [resolvable:$true] %s268_s6 }
  0x29   :  { %v295_v9 = vpack.c.bf16 %v46_v7, %v42_v6  ;;  %v52_v11 = vld [vmem:[#allocation2 + $0x68] sm:$0xff]  ;;  %v45_v14 = vld [vmem:[#allocation2 + $0x30] sm:$0xff]  ;;  %v47_v15 = vld [vmem:[#allocation2 + $0x40] sm:$0xff]  ;;  %s359_s7 = scalar_lea.vmem %s269_s6, 512  ;;  %p364_p3 = scmp.lt.s32.totalorder %s269_s6, %s269_s6 }
  0x2a   :  { %288 = vmatprep.subr.bf16.mxu0 %v287_v4  ;;  %v291_v13 = vpack.c.bf16 %v52_v11, %v48_v10  ;;  %v51_v16 = vld [vmem:[#allocation2 + $0x60] sm:$0xff]  ;;  %v297_v17 = vpack.c.bf16 %v45_v14, %v41_v12  ;;  %v50_v19 = vld [vmem:[#allocation2 + $0x58] sm:$0xff]  ;;  %v49_v22 = vld [vmem:[#allocation2 + $0x50] sm:$0xff]  ;;  %p360_p2 = scmp.ne.s32.totalorder %s269_s6, %s359_s7  ;;  %p365_p4 = scmp.lt.s32.totalorder %s359_s7, %s359_s7 }
  0x2b   :  { %290 = vmatpush1.bf16.msra.mxu0 %v289_v8  ;;  %296 = vmatprep.subr.bf16.mxu1 %v295_v9  ;;  %v293_v18 = vpack.c.bf16 %v51_v16, %v47_v15  ;;  %v54_v20 = vld [vmem:[#allocation2 + $0x78] sm:$0xff]  ;;  %v53_v23 = vld [vmem:[#allocation2 + $0x70] sm:$0xff]  ;;  %v56_v24 = vld [vmem:[#allocation2 + $0x88] sm:$0xf] }
  0x2c   :  { %292 = vmatprep.subr.bf16.mxu0 %v291_v13  ;;  %v299_v21 = vpack.c.bf16 %v54_v20, %v50_v19  ;;  %298 = vmatpush1.bf16.msra.mxu1 %v297_v17  ;;  %v301_v25 = vpack.c.bf16 %v53_v23, %v49_v22  ;;  %v58_v26 = vld [vmem:[#allocation2 + $0x98] sm:$0xf]  ;;  %v55_v27 = vld [vmem:[#allocation2 + $0x80] sm:$0xf]  ;;  %v57_v29 = vld [vmem:[#allocation2 + $0x90] sm:$0xf]  ;;  %p366_p5 = por %p365_p4, %p364_p3 }
  0x2d   :  { %v38_v28 = vld [vmem:[#allocation5] sm:$0xff] }
  0x2e   :  { %300 = vmatprep.subr.bf16.mxu1 %v299_v21  ;;  %p367_p6 = pnand %p366_p5, %p360_p2 }
  0x2f   :  { %294 = vmatpush1.bf16.msra.mxu0 %v293_v18 }
  0x30   :  { %281 = vmatprep.subr.msk.mxu0 %vm63_vm0, %v56_v24  ;;  %302 = vmatpush1.bf16.msra.mxu1 %v301_v25 }
  0x31   :  { %284 = vmatprep.subr.msk.mxu1 %vm63_vm0, %v58_v26 }
  0x33   :  { %282 = vmatpush1.msk.msra.mxu0 %vm63_vm0, %v55_v27 }
  0x34   :  { %283 = vmatmul.mubr.msk.f32.vlgmr.msra.gmra.mrb[0].mxu0 %vm59_vm1, %v38_v28  ;;  %285 = vmatpush1.msk.msra.mxu1 %vm63_vm0, %v57_v29 }
  0x35   :  { %286 = vmatmul.mubr.msk.f32.vlgmr.msra.gmra.mrb[0].mxu1 %vm59_vm1, %v38_v28 }
 0x107   :  { %v142_v30 = vpop.f32.mrb[0].mxu0 }
 0x108   :  { %v144_v31 = vpop.f32.mrb[1].mxu0  ;;  %v221_v32 = vmul.f32 %v142_v30, %v142_v30  ;;  %v213_v34 = vpop.f32.mrb[0].mxu1 }
 0x109   :  { %v222_v33 = vmul.f32 %v144_v31, %v144_v31  ;;  %v218_v35 = vadd.f32 %v144_v31, %v142_v30  ;;  %v215_v36 = vpop.f32.mrb[1].mxu1  ;;  %v243_v37 = vmul.f32 %v213_v34, %v213_v34 }
 0x10a   :  { %v244_v38 = vmul.f32 %v215_v36, %v215_v36  ;;  %v240_v40 = vadd.f32 %v215_v36, %v213_v34 }
 0x10b   :  { %219 = vadd.xlane.f32.xlu0 %v218_v35  ;;  %v223_v39 = vadd.f32 %v222_v33, %v221_v32 }
 0x10c   :  { %v245_v41 = vadd.f32 %v244_v38, %v243_v37 }
 0x10d   :  { %224 = vadd.xlane.f32.xlu1 %v223_v39 }
 0x10f   :  { %241 = vadd.xlane.f32.xlu0 %v240_v40 }
 0x111   :  { %246 = vadd.xlane.f32.xlu1 %v245_v41 }
 0x198   :  { %v220_v42 = vpop.xlane.xlu0 %219 }
 0x199   :  { %v226_v43 = vmul.f32 0.00390625, %v220_v42 }
 0x19a   :  { %v225_v44 = vpop.xlane.xlu1 %224 }
 0x19b   :  { %v227_v45 = vmul.f32 0.00390625, %v225_v44  ;;  %v228_v46 = vmul.f32 %v226_v43, %v226_v43  ;;  %v230_v56 = vsub.f32 %v142_v30, %v226_v43  ;;  %v231_v57 = vsub.f32 %v144_v31, %v226_v43 }
 0x19c   :  { %v242_v47 = vpop.xlane.xlu0 %241 }
 0x19d   :  { %v229_v48 = vsub.f32 %v227_v45, %v228_v46  ;;  %v248_v49 = vmul.f32 0.00390625, %v242_v47 }
 0x19e   :  { %v247_v50 = vpop.xlane.xlu1 %246 }
 0x19f   :  { %v232_v51 = vadd.f32 1e-05, %v229_v48  ;;  %v249_v52 = vmul.f32 0.00390625, %v247_v50  ;;  %v250_v53 = vmul.f32 %v248_v49, %v248_v49  ;;  %v252_v63 = vsub.f32 %v213_v34, %v248_v49 }
 0x1a0   :  { %v253_v0 = vsub.f32 %v215_v36, %v248_v49 }
 0x1a1   :  { %311 = vrsqrt.f32 %v232_v51  ;;  %v251_v54 = vsub.f32 %v249_v52, %v250_v53 }
 0x1a3   :  { %v254_v55 = vadd.f32 1e-05, %v251_v54 }
 0x1a5   :  { %313 = vrsqrt.f32 %v254_v55 }
 0x1ab   :  { %v312_v58 = vpop.eup %311 }
 0x1ac   :  { %v234_v59 = vmul.f32 %v312_v58, %v230_v56  ;;  %v235_v60 = vmul.f32 %v312_v58, %v231_v57 }
 0x1ae   :  { %v236_v61 = vmax.f32 %v234_v59, 0.0  ;;  %v237_v62 = vmax.f32 %v235_v60, 0.0 }
 0x1af   :  { %v314_v1 = vpop.eup %313 }
 0x1b0   :  { %238 = vst [vmem:[#allocation7] sm:$0xff] %v236_v61  ;;  %239 = vst [vmem:[#allocation7 + $0x8] sm:$0xff] %v237_v62  ;;  %v256_v2 = vmul.f32 %v314_v1, %v252_v63  ;;  %v257_v3 = vmul.f32 %v314_v1, %v253_v0 }
 0x1b2   :  { %v258_v4 = vmax.f32 %v256_v2, 0.0  ;;  %v259_v5 = vmax.f32 %v257_v3, 0.0 }
 0x1b4   :  { %261 = vst [vmem:[#allocation7 + $0x10] sm:$0xff] %v258_v4  ;;  %262 = vst [vmem:[#allocation7 + $0x18] sm:$0xff] %v259_v5 }
 0x1b5   :  { %370 = shalt.err (!%p367_p6)
}
 0x1b6   :  { %s371_s10 = scalar_lea.hbm %s448_s2, 512 }
 0x1b7   :  { %p372_p7 = scmp.ne.s32.totalorder %s448_s2, %s371_s10  ;;  %p375_p8 = scmp.lt.u32.totalorder %s371_s10, %s448_s2 }
 0x1b9   :  { %p377_p9 = pnand %p375_p8, %p372_p7 }
 0x1bb   :  { %380 = shalt.err (!%p377_p9)
}
 0x1bc   :  { %s393_s15 = smov 256   ;;  %s394_s16 = smov 16  }
 0x1bd   :  { %274 = dma.vmem_to_hbm [thread:$0]  %s269_s6, 512, %s448_s2, [#allocation4], %s393_s15, %s393_s15, %s394_s16  }
 0x1be   :  { %385 = dma.done.wait [#allocation4], 512  }
 0x1bf   :  { %386 = vsyncadd [#allocation4], 4294966784 }
 0x1c0   :  { %278 = vsyncpa [#allocation3], 1 }
 0x1c1   :  { %279 = vsyncpa [#allocation6], 1 }
 0x1c2   :  { %280 = vsyncpa [#allocation4], 1 }

</bundles_post_ra>
